<compile_context>
chip_gen: v5e
topology: v5e:2x2
jax: 0.10.0
libtpu: 0.0.40
codegen_flags: <defaults>
</compile_context>

<pallas_src>
import functools

import jax
import jax.numpy as jnp
from jax.experimental import pallas as pl
from jax.experimental.pallas import tpu as pltpu

IGNORE_INDEX = -100

_VMEM_TILE_BUDGET = 10 * 1024 * 1024   # per-tile budget (2x input buffers + f32 temps)
_VMEM_LIMIT = 32 * 1024 * 1024         # scoped VMEM: safe on v5e/v6e (128 MiB) and v7x (64 MiB)


def _cdiv(a, b):
    return -(-a // b)


def _round_up(x, m):
    return _cdiv(x, m) * m


def _pick_col_tile(n_rows, num_classes, itemsize):
    # Bytes per column in flight: 2 double-buffered input columns + ~4 live f32 temps.
    per_col = num_classes * (2 * itemsize + 16) + 24
    tile = (_VMEM_TILE_BUDGET // per_col) // 128 * 128
    tile = max(128, min(tile, 16384))
    return min(tile, _round_up(n_rows, 128))


def _pick_row_tile(n_rows, num_classes, itemsize):
    per_row = num_classes * (2 * itemsize + 16) + 24
    tile = (_VMEM_TILE_BUDGET // per_row) // 8 * 8
    tile = max(8, min(tile, 4096))
    return min(tile, _round_up(n_rows, 8))


def _focal_from_ce(ce, gamma):
    """(1 - exp(-ce))**gamma * ce, specialized for integer gamma (no EUP pow)."""
    pt = jnp.exp(-ce)
    omp = 1.0 - pt
    if gamma == 2.0:
        mod = omp * omp
    elif gamma == 1.0:
        mod = omp
    elif gamma == 0.0:
        mod = jnp.ones_like(omp)
    elif float(gamma).is_integer() and 0.0 < gamma <= 8.0:
        mod = omp
        for _ in range(int(gamma) - 1):
            mod = mod * omp
    else:
        mod = jnp.power(jnp.maximum(omp, 0.0), gamma)
    return mod * ce


# ----------------------------------------------------------------------------------
# Lane-dense kernel for small class counts: logits presented as [C, n_cols],
# classes on sublanes, rows on lanes.  Grid = (num_chunks [parallel], tiles [arbitrary]).
# ----------------------------------------------------------------------------------
def _focal_loss_cmajor_kernel(logits_ref, target_ref, weight_ref, out_ref, acc_ref, *, gamma):
    k = pl.program_id(1)

    @pl.when(k == 0)
    def _():
        acc_ref[...] = jnp.zeros_like(acc_ref)

    logits = logits_ref[...].astype(jnp.float32)      # [C, T]  (bf16 inputs cast per tile)
    tgt = target_ref[...]                             # [1, T] int32
    w = weight_ref[...].astype(jnp.float32)           # [C, 1]

    # Numerically stable log-softmax pieces over the class (sublane) axis.
    # The full logp matrix is never materialized.
    m = jnp.max(logits, axis=0, keepdims=True)                            # [1, T]
    shifted = logits - m                                                  # [C, T]
    lse = jnp.log(jnp.sum(jnp.exp(shifted), axis=0, keepdims=True))       # [1, T]

    cls = jax.lax.broadcasted_iota(jnp.int32, logits.shape, 0)            # [C, T]
    hit = cls == tgt                                                      # [C, T]
    tgt_shift = jnp.sum(jnp.where(hit, shifted, 0.0), axis=0, keepdims=True)  # [1, T]
    tgt_w = jnp.sum(jnp.where(hit, w, 0.0), axis=0, keepdims=True)            # [1, T]

    # ignore_index rows (and padded columns, which carry IGNORE_INDEX) contribute 0.
    valid = tgt != IGNORE_INDEX
    ce = jnp.where(valid, (lse - tgt_shift) * tgt_w, 0.0)                 # [1, T]

    # Per-lane partial sums; reduced to a scalar only once per chunk.
    acc_ref[...] += _focal_from_ce(ce, gamma)

    @pl.when(k == pl.num_programs(1) - 1)
    def _():
        out_ref[...] = jnp.sum(acc_ref[...], axis=1, keepdims=True).reshape(1, 1, 1)


def _focal_loss_cmajor(x, t, weight, gamma, col_tile=None):
    n_rows, num_classes = x.shape
    itemsize = jnp.dtype(x.dtype).itemsize
    if col_tile is None:
        col_tile = _pick_col_tile(n_rows, num_classes, itemsize)
    assert col_tile % 128 == 0

    total_tiles = _cdiv(n_rows, col_tile)
    num_chunks = 2 if total_tiles >= 2 else 1          # >=2 partial sums keeps both v7x TCs busy
    tiles_per_chunk = _cdiv(total_tiles, num_chunks)
    n_cols = num_chunks * tiles_per_chunk * col_tile

    # Lane-dense layout: classes -> sublanes, rows -> lanes.  The transpose (+ the
    # small tail pad, at most 2 tiles of zero columns) is one copy that XLA can fuse
    # with the producer of the logits.
    xt = jnp.transpose(x)                               # [C, N], original dtype
    pad = n_cols - n_rows
    if pad:
        xt = jnp.pad(xt, ((0, 0), (0, pad)))
        t = jnp.pad(t, (0, pad), constant_values=IGNORE_INDEX)
    t2 = t.reshape(1, n_cols)
    w2 = weight.reshape(num_classes, 1)

    kernel = functools.partial(_focal_loss_cmajor_kernel, gamma=float(gamma))
    partials = pl.pallas_call(
        kernel,
        out_shape=jax.ShapeDtypeStruct((num_chunks, 1, 1), jnp.float32),
        grid_spec=pltpu.PrefetchScalarGridSpec(
            num_scalar_prefetch=0,
            grid=(num_chunks, tiles_per_chunk),
            in_specs=[
                pl.BlockSpec((num_classes, col_tile),
                             lambda p, k: (0, p * tiles_per_chunk + k)),
                pl.BlockSpec((1, col_tile),
                             lambda p, k: (0, p * tiles_per_chunk + k)),
                pl.BlockSpec((num_classes, 1), lambda p, k: (0, 0)),
            ],
            out_specs=pl.BlockSpec((1, 1, 1), lambda p, k: (p, 0, 0)),
            scratch_shapes=[pltpu.VMEM((1, col_tile), jnp.float32)],
        ),
        compiler_params=pltpu.CompilerParams(
            dimension_semantics=("parallel", "arbitrary"),
            vmem_limit_bytes=_VMEM_LIMIT,
        ),
    )(xt, t2, w2)
    # .mean() in the PyTorch module divides by ALL rows (ignored ones included).
    return jnp.sum(partials) / n_rows


# ----------------------------------------------------------------------------------
# Row-major fallback for large class counts (C >= 128 is already lane-dense).
# No padded copy of the logits: the partial tail tile is masked in-kernel.
# ----------------------------------------------------------------------------------
def _focal_loss_rmajor_kernel(logits_ref, target_ref, weight_ref, out_ref, acc_ref, *,
                              gamma, n_rows, row_tile, tiles_per_chunk):
    p = pl.program_id(0)
    k = pl.program_id(1)

    @pl.when(k == 0)
    def _():
        acc_ref[...] = jnp.zeros_like(acc_ref)

    logits = logits_ref[...].astype(jnp.float32)      # [R, C]
    tgt = target_ref[...]                             # [R, 1] int32
    w = weight_ref[...].astype(jnp.float32)           # [1, C]

    m = jnp.max(logits, axis=-1, keepdims=True)
    shifted = logits - m
    lse = jnp.log(jnp.sum(jnp.exp(shifted), axis=-1, keepdims=True))

    cls = jax.lax.broadcasted_iota(jnp.int32, logits.shape, 1)
    hit = cls == tgt
    tgt_shift = jnp.sum(jnp.where(hit, shifted, 0.0), axis=-1, keepdims=True)  # [R, 1]
    tgt_w = jnp.sum(jnp.where(hit, w, 0.0), axis=-1, keepdims=True)            # [R, 1]

    # Mask ignore_index rows and the out-of-range rows of the partial tail tile
    # (their logits/targets are unspecified; the where() keeps them at exactly 0).
    row0 = (p * tiles_per_chunk + k) * row_tile
    rows = row0 + jax.lax.broadcasted_iota(jnp.int32, tgt.shape, 0)
    valid = (tgt != IGNORE_INDEX) & (rows < n_rows)

    ce = jnp.where(valid, (lse - tgt_shift) * tgt_w, 0.0)                      # [R, 1]
    acc_ref[...] += _focal_from_ce(ce, gamma)

    @pl.when(k == pl.num_programs(1) - 1)
    def _():
        out_ref[...] = jnp.sum(acc_ref[...], axis=0, keepdims=True).reshape(1, 1, 1)


def _focal_loss_rmajor(x, t, weight, gamma, row_tile=None):
    n_rows, num_classes = x.shape
    itemsize = jnp.dtype(x.dtype).itemsize
    if row_tile is None:
        row_tile = _pick_row_tile(n_rows, num_classes, itemsize)
    assert row_tile % 8 == 0

    total_tiles = _cdiv(n_rows, row_tile)
    # Split rows into 2 independent partial sums (v7x: one per TensorCore) whenever
    # the tile count divides evenly, so every block index stays in bounds without
    # a padded copy of the logits.  Odd tile counts fall back to a single chunk.
    num_chunks = 2 if (total_tiles >= 2 and total_tiles % 2 == 0) else 1
    tiles_per_chunk = total_tiles // num_chunks

    t2 = t.reshape(n_rows, 1)
    w2 = weight.reshape(1, num_classes)

    kernel = functools.partial(_focal_loss_rmajor_kernel, gamma=float(gamma),
                               n_rows=n_rows, row_tile=row_tile,
                               tiles_per_chunk=tiles_per_chunk)
    partials = pl.pallas_call(
        kernel,
        out_shape=jax.ShapeDtypeStruct((num_chunks, 1, 1), jnp.float32),
        grid_spec=pltpu.PrefetchScalarGridSpec(
            num_scalar_prefetch=0,
            grid=(num_chunks, tiles_per_chunk),
            in_specs=[
                pl.BlockSpec((row_tile, num_classes),
                             lambda p, k: (p * tiles_per_chunk + k, 0)),
                pl.BlockSpec((row_tile, 1),
                             lambda p, k: (p * tiles_per_chunk + k, 0)),
                pl.BlockSpec((1, num_classes), lambda p, k: (0, 0)),
            ],
            out_specs=pl.BlockSpec((1, 1, 1), lambda p, k: (p, 0, 0)),
            scratch_shapes=[pltpu.VMEM((row_tile, 1), jnp.float32)],
        ),
        compiler_params=pltpu.CompilerParams(
            dimension_semantics=("parallel", "arbitrary"),
            vmem_limit_bytes=_VMEM_LIMIT,
        ),
    )(x, t2, w2)
    return jnp.sum(partials) / n_rows


def focal_loss(logits, target, weight=None, gamma=2.0, *, col_tile=None, row_tile=None):
    """FocalLoss.forward: logits [batch, seq, C] (or [N, C]); target [batch, seq] (or [N]).

    Logits may be bf16 or f32; they are consumed in their HBM dtype and cast to f32
    per tile inside the kernel (halves HBM traffic for bf16 on this memory-bound op).
    """
    num_classes = logits.shape[-1]
    x = logits.reshape(-1, num_classes)              # keep the input dtype
    t = target.reshape(-1).astype(jnp.int32)
    if weight is None:
        weight = jnp.ones((num_classes,), jnp.float32)
    weight = jnp.asarray(weight, jnp.float32)

    if num_classes < 128:
        return _focal_loss_cmajor(x, t, weight, gamma, col_tile=col_tile)
    return _focal_loss_rmajor(x, t, weight, gamma, row_tile=row_tile)


def _focal_loss_ref(logits, target, weight, gamma):
    """Pure-JAX reference reproducing the PyTorch FocalLoss semantics."""
    x = logits.reshape(-1, logits.shape[-1]).astype(jnp.float32)
    t = target.reshape(-1)
    logp = jax.nn.log_softmax(x, axis=-1)
    safe_t = jnp.where(t == IGNORE_INDEX, 0, t)
    tgt_logp = jnp.take_along_axis(logp, safe_t[:, None], axis=-1)[:, 0]
    tgt_w = jnp.ones_like(tgt_logp) if weight is None else weight[safe_t]
    valid = (t != IGNORE_INDEX).astype(jnp.float32)
    ce = -tgt_logp * tgt_w * valid
    pt = jnp.exp(-ce)
    focal = (1.0 - pt) ** gamma * ce
    return jnp.mean(focal)


if __name__ == "__main__":
    key = jax.random.PRNGKey(0)
    k1, k2, k3, k4, k5, k6 = jax.random.split(key, 6)
    gamma = 2.0

    # --- NER-shaped case (small C) -> lane-dense transposed kernel path.
    batch, seq, num_classes = 2, 8, 9
    logits = jax.random.normal(k1, (batch, seq, num_classes), dtype=jnp.float32)
    target = jax.random.randint(k2, (batch, seq), 0, num_classes, dtype=jnp.int32)
    ignore_mask = jax.random.bernoulli(k3, 0.25, (batch, seq))
    target = jnp.where(ignore_mask, jnp.int32(IGNORE_INDEX), target)
    weight = jnp.linspace(0.5, 1.5, num_classes, dtype=jnp.float32)

    loss = jax.block_until_ready(focal_loss(logits, target, weight=weight, gamma=gamma))
    ref = _focal_loss_ref(logits, target, weight, gamma)
    assert jnp.allclose(loss, ref, rtol=1e-5, atol=1e-6), (loss, ref)

    # --- Same case with bf16 logits (kernel reads bf16 from HBM, computes in f32).
    logits_bf16 = logits.astype(jnp.bfloat16)
    loss_bf16 = jax.block_until_ready(focal_loss(logits_bf16, target, weight=weight, gamma=gamma))
    ref_bf16 = _focal_loss_ref(logits_bf16, target, weight, gamma)
    assert jnp.allclose(loss_bf16, ref_bf16, rtol=1e-4, atol=1e-5), (loss_bf16, ref_bf16)

    # --- Larger small-C case exercising multi-tile grid, 2-way chunking and column padding.
    b2, s2 = 3, 160                                   # N = 480 rows
    logits2 = jax.random.normal(k4, (b2, s2, num_classes), dtype=jnp.float32)
    target2 = jax.random.randint(k5, (b2, s2), 0, num_classes, dtype=jnp.int32)
    target2 = jnp.where(jax.random.bernoulli(k6, 0.2, (b2, s2)),
                        jnp.int32(IGNORE_INDEX), target2)
    loss2 = jax.block_until_ready(
        focal_loss(logits2, target2, weight=weight, gamma=gamma, col_tile=128))
    ref2 = _focal_loss_ref(logits2, target2, weight, gamma)
    assert jnp.allclose(loss2, ref2, rtol=1e-5, atol=1e-6), (loss2, ref2)

    # --- Large class count -> row-major path (no transpose, masked partial tail tile).
    n3, c3 = 380, 256                                 # 6 tiles of 64 rows, tail has 60 valid rows
    logits3 = jax.random.normal(k1, (n3, c3), dtype=jnp.float32)
    target3 = jax.random.randint(k2, (n3,), 0, c3, dtype=jnp.int32)
    target3 = jnp.where(jax.random.bernoulli(k3, 0.1, (n3,)),
                        jnp.int32(IGNORE_INDEX), target3)
    loss3 = jax.block_until_ready(
        focal_loss(logits3, target3, weight=None, gamma=gamma, row_tile=64))
    ref3 = _focal_loss_ref(logits3, target3, None, gamma)
    assert jnp.allclose(loss3, ref3, rtol=1e-5, atol=1e-6), (loss3, ref3)

    print("KERNEL_OK")
</pallas_src>

<mosaic_0001>
module attributes {stable_mosaic.version = 11 : i64} {
  func.func @_focal_loss_cmajor_kernel(%arg0: i32, %arg1: i32, %arg2: memref<9x128xf32, #tpu.memory_space<vmem>>, %arg3: memref<1x128xi32, #tpu.memory_space<vmem>>, %arg4: memref<9x1xf32, #tpu.memory_space<vmem>>, %arg5: memref<1x1x1xf32, #tpu.memory_space<vmem>>, %arg6: memref<1x128xf32, #tpu.memory_space<vmem>>) attributes {dimension_semantics = [#tpu.dimension_semantics<parallel>, #tpu.dimension_semantics<arbitrary>], iteration_bounds = array<i64: 1, 1>, scalar_prefetch = 0 : i64, scratch_operands = 1 : i64, tpu.core_type = #tpu.core_type<tc>, window_params = [{transform_indices = @transform_0, window_bounds = array<i64: 9, 128>}, {transform_indices = @transform_1, window_bounds = array<i64: 1, 128>}, {pipeline_mode = #tpu.pipeline_mode<synchronous>, transform_indices = @transform_2, window_bounds = array<i64: 9, 1>}, {transform_indices = @transform_3, window_bounds = array<i64: 1, 1, 1>}]} {
    %c0_i32 = arith.constant 0 : i32
    %0 = arith.cmpi eq, %arg1, %c0_i32 : i32
    %1 = arith.extui %0 : i1 to i32
    %c0_i32_0 = arith.constant 0 : i32
    %2 = arith.cmpi ne, %1, %c0_i32_0 : i32
    scf.if %2 {
      %cst_20 = arith.constant 0.000000e+00 : f32
      %46 = vector.broadcast %cst_20 : f32 to vector<1x128xf32>
      %c0_21 = arith.constant 0 : index
      %c0_22 = arith.constant 0 : index
      %47 = vector.load %arg6[%c0_21, %c0_22] : memref<1x128xf32, #tpu.memory_space<vmem>>, vector<1x128xf32>
      tpu.vector_store %arg6[%c0_21, %c0_22], %46 {strides = array<i32>} : memref<1x128xf32, #tpu.memory_space<vmem>>, vector<1x128xf32>,
    } else {
    }
    %c0 = arith.constant 0 : index
    %c0_1 = arith.constant 0 : index
    %3 = vector.load %arg2[%c0, %c0_1] : memref<9x128xf32, #tpu.memory_space<vmem>>, vector<9x128xf32>
    %c0_2 = arith.constant 0 : index
    %c0_3 = arith.constant 0 : index
    %4 = vector.load %arg3[%c0_2, %c0_3] : memref<1x128xi32, #tpu.memory_space<vmem>>, vector<1x128xi32>
    %c0_4 = arith.constant 0 : index
    %c0_5 = arith.constant 0 : index
    %5 = vector.load %arg4[%c0_4, %c0_5] : memref<9x1xf32, #tpu.memory_space<vmem>>, vector<9x1xf32>
    %cst = arith.constant dense<0xFF800000> : vector<128xf32>
    %6 = vector.multi_reduction <maximumf>, %3, %cst [0] : vector<9x128xf32> to vector<128xf32>
    %7 = vector.shape_cast %6 : vector<128xf32> to vector<1x128xf32>
    %8 = vector.broadcast %7 : vector<1x128xf32> to vector<9x128xf32>
    %9 = arith.subf %3, %8 : vector<9x128xf32>
    %10 = math.exp %9 : vector<9x128xf32>
    %cst_6 = arith.constant dense<0.000000e+00> : vector<128xf32>
    %11 = vector.multi_reduction <add>, %10, %cst_6 [0] : vector<9x128xf32> to vector<128xf32>
    %12 = vector.shape_cast %11 : vector<128xf32> to vector<1x128xf32>
    %13 = math.log %12 : vector<1x128xf32>
    %14 = tpu.iota {dimensions = array<i32: 0>} : vector<9x128xi32>
    %15 = vector.broadcast %4 : vector<1x128xi32> to vector<9x128xi32>
    %16 = arith.cmpi eq, %14, %15 : vector<9x128xi32>
    %cst_7 = arith.constant 0.000000e+00 : f32
    %17 = vector.broadcast %cst_7 : f32 to vector<9x128xf32>
    %18 = arith.select %16, %9, %17 : vector<9x128xi1>, vector<9x128xf32>
    %cst_8 = arith.constant dense<0.000000e+00> : vector<128xf32>
    %19 = vector.multi_reduction <add>, %18, %cst_8 [0] : vector<9x128xf32> to vector<128xf32>
    %20 = vector.shape_cast %19 : vector<128xf32> to vector<1x128xf32>
    %cst_9 = arith.constant 0.000000e+00 : f32
    %21 = vector.shape_cast %5 : vector<9x1xf32> to vector<9x1xf32>
    %22 = vector.broadcast %21 : vector<9x1xf32> to vector<9x128xf32>
    %23 = vector.broadcast %cst_9 : f32 to vector<9x128xf32>
    %24 = arith.select %16, %22, %23 : vector<9x128xi1>, vector<9x128xf32>
    %cst_10 = arith.constant dense<0.000000e+00> : vector<128xf32>
    %25 = vector.multi_reduction <add>, %24, %cst_10 [0] : vector<9x128xf32> to vector<128xf32>
    %26 = vector.shape_cast %25 : vector<128xf32> to vector<1x128xf32>
    %c-100_i32 = arith.constant -100 : i32
    %27 = vector.broadcast %c-100_i32 : i32 to vector<1x128xi32>
    %28 = arith.cmpi ne, %4, %27 : vector<1x128xi32>
    %29 = arith.subf %13, %20 : vector<1x128xf32>
    %30 = arith.mulf %29, %26 : vector<1x128xf32>
    %cst_11 = arith.constant 0.000000e+00 : f32
    %31 = vector.broadcast %cst_11 : f32 to vector<1x128xf32>
    %32 = arith.select %28, %30, %31 : vector<1x128xi1>, vector<1x128xf32>
    %c0_12 = arith.constant 0 : index
    %c0_13 = arith.constant 0 : index
    %33 = vector.load %arg6[%c0_12, %c0_13] : memref<1x128xf32, #tpu.memory_space<vmem>>, vector<1x128xf32>
    %cst_14 = arith.constant 0.000000e+00 : f32
    %34 = vector.broadcast %cst_14 : f32 to vector<1x128xf32>
    %35 = arith.subf %34, %32 : vector<1x128xf32>
    %36 = math.exp %35 : vector<1x128xf32>
    %cst_15 = arith.constant 1.000000e+00 : f32
    %37 = vector.broadcast %cst_15 : f32 to vector<1x128xf32>
    %38 = arith.subf %37, %36 : vector<1x128xf32>
    %39 = arith.mulf %38, %38 : vector<1x128xf32>
    %40 = arith.mulf %39, %32 : vector<1x128xf32>
    %41 = arith.addf %33, %40 : vector<1x128xf32>
    %c0_16 = arith.constant 0 : index
    %c0_17 = arith.constant 0 : index
    %42 = vector.load %arg6[%c0_16, %c0_17] : memref<1x128xf32, #tpu.memory_space<vmem>>, vector<1x128xf32>
    tpu.vector_store %arg6[%c0_16, %c0_17], %41 {strides = array<i32>} : memref<1x128xf32, #tpu.memory_space<vmem>>, vector<1x128xf32>,
    %c0_i32_18 = arith.constant 0 : i32
    %43 = arith.cmpi eq, %arg1, %c0_i32_18 : i32
    %44 = arith.extui %43 : i1 to i32
    %c0_i32_19 = arith.constant 0 : i32
    %45 = arith.cmpi ne, %44, %c0_i32_19 : i32
    scf.if %45 {
      %c0_20 = arith.constant 0 : index
      %c0_21 = arith.constant 0 : index
      %46 = vector.load %arg6[%c0_20, %c0_21] : memref<1x128xf32, #tpu.memory_space<vmem>>, vector<1x128xf32>
      %cst_22 = arith.constant dense<0.000000e+00> : vector<1xf32>
      %47 = vector.multi_reduction <add>, %46, %cst_22 [1] : vector<1x128xf32> to vector<1xf32>
      %48 = vector.shape_cast %47 : vector<1xf32> to vector<1x1xf32>
      %49 = vector.shape_cast %48 : vector<1x1xf32> to vector<1x1x1xf32>
      %c0_23 = arith.constant 0 : index
      %c0_24 = arith.constant 0 : index
      %c0_25 = arith.constant 0 : index
      %50 = vector.load %arg5[%c0_23, %c0_24, %c0_25] : memref<1x1x1xf32, #tpu.memory_space<vmem>>, vector<1x1x1xf32>
      tpu.vector_store %arg5[%c0_23, %c0_24, %c0_25], %49 {strides = array<i32>} : memref<1x1x1xf32, #tpu.memory_space<vmem>>, vector<1x1x1xf32>,
    } else {
    }
    return
  }
  func.func @transform_0(%arg0: i32, %arg1: i32) -> (i32, i32) {
    %c1_i32 = arith.constant 1 : i32
    %0 = arith.muli %arg0, %c1_i32 : i32
    %1 = arith.addi %0, %arg1 : i32
    %c0_i32 = arith.constant 0 : i32
    %c0_i32_0 = arith.constant 0 : i32
    return %c0_i32, %1 : i32, i32
  }
  func.func @transform_1(%arg0: i32, %arg1: i32) -> (i32, i32) {
    %c1_i32 = arith.constant 1 : i32
    %0 = arith.muli %arg0, %c1_i32 : i32
    %1 = arith.addi %0, %arg1 : i32
    %c0_i32 = arith.constant 0 : i32
    %c0_i32_0 = arith.constant 0 : i32
    return %c0_i32, %1 : i32, i32
  }
  func.func @transform_2(%arg0: i32, %arg1: i32) -> (i32, i32) {
    %c0_i32 = arith.constant 0 : i32
    %c0_i32_0 = arith.constant 0 : i32
    %c0_i32_1 = arith.constant 0 : i32
    return %c0_i32, %c0_i32_0 : i32, i32
  }
  func.func @transform_3(%arg0: i32, %arg1: i32) -> (i32, i32, i32) {
    %c0_i32 = arith.constant 0 : i32
    %c0_i32_0 = arith.constant 0 : i32
    %c0_i32_1 = arith.constant 0 : i32
    return %arg0, %c0_i32, %c0_i32_0 : i32, i32, i32
  }
}

</mosaic_0001>

<bundles_post_ra>
// kernel: tpu_custom_call.1
= control target key start
LH: loop header
LB: loop body
LE: loop exit
PB: predicated region body
PF: predicated region fallthrough
CT: control target
= control target key end

     0   :  { %v203_v1 = vmov 0   ;;  %s254_s0 = inlined_call_operand.vmem [shape: f32[9,128], index: 0, kind: input, shape index: {}]   ;;  %s255_s1 = inlined_call_operand.vmem [shape: s32[1,128], index: 1, kind: input, shape index: {}]   ;;  %s256_s2 = inlined_call_operand.vmem [shape: f32[9,1], index: 2, kind: input, shape index: {}]   ;;  %s257_s3 = inlined_call_operand.hbm [shape: f32[1,1,1], index: 3, kind: output, shape index: {}]  }
   0x1   :  { %v55_v0 = vld [vmem:[%s256_s2 + $0x8] sm:$0x1]  ;;  %167 = vset.pattern.permute.xlu0 %v203_v1 }
   0x2   :  { %8 = vsyncpa [#allocation4], 0  ;;  %104 = vperm.xlu0 %167, %v55_v0   ;;  %v54_v2 = vld [vmem:[%s256_s2] sm:$0xff]  ;;  %vm56_vm0 = vcmask 1040384   ;;  %v52_v3 = vld [vmem:[%s254_s0 + $0x8] sm:$0x1]  ;;  %v81_v18 = vlaneseq }
   0x3   :  { %v51_v4 = vld [vmem:[%s254_s0] sm:$0xff]  ;;  %v57_v5 = vsel %vm56_vm0, %v52_v3, -inf  ;;  %v204_v22 = vmov 0.0   ;;  %s146_s25 = sshll.u32 %s257_s3, 4  ;;  %vm137_vm4 = vcmask 0   ;;  %s147_s25 = int_to_ptr.hbm [resolvable:$true] %s146_s25 }
   0x4   :  { %v58_v6 = vmax.f32 %v51_v4, %v57_v5  ;;  %v82_v21 = vshrl.u32 %v81_v18, 7  ;;  %50 = vst [vmem:[#allocation2] sm:$0x1] %v204_v22  ;;  %v168_v25 = vld [vmem:[%s255_s1] ss:$0 sm:$0xff] }
   0x5   :  { %v53_v54 = vld [vmem:[%s255_s1] sm:$0x1]  ;;  %s205_s1 = smov [#allocation3]  }
   0x6   :  { %v59_v7 = vrot.slane %v58_v6, 4  ;;  %v83_v24 = vadd.s32 8, %v82_v21  ;;  %vm85_vm2 = vcmp.eq.s32.totalorder %v82_v21, %v168_v25  ;;  %vm117_vm3 = vcmp.ne.s32.totalorder %v53_v54, 4294967196  ;;  %s144_s22 = sshll.u32 %s205_s1, 4  ;;  %s145_s22 = int_to_ptr.vmem [resolvable:$true] %s144_s22 }
   0x8   :  { %v60_v8 = vmax.f32 %v58_v6, %v59_v7  ;;  %vm86_vm1 = vcmp.eq.s32.totalorder %v83_v24, %v168_v25 }
   0xa   :  { %99 = vperm.xlu0 %167, %v54_v2   ;;  %v61_v9 = vrot.slane %v60_v8, 2 }
   0xb   :  { %v121_v1 = vld [vmem:[#allocation2] sm:$0x1] }
   0xc   :  { %v62_v10 = vmax.f32 %v60_v8, %v61_v9 }
   0xe   :  { %v63_v11 = vrot.slane %v62_v10, 1 }
  0x10   :  { %v64_v12 = vmax.f32 %v62_v10, %v63_v11 }
  0x12   :  { %v66_v13 = vsub.f32 %v52_v3, %v64_v12  ;;  %v65_v14 = vsub.f32 %v51_v4, %v64_v12 }
  0x14   :  { %v69_v15 = vmul.f32 1.442695, %v66_v13  ;;  %v67_v16 = vmul.f32 1.442695, %v65_v14  ;;  %v88_v27 = vsel %vm86_vm1, %v66_v13, 0.0  ;;  %v87_v30 = vsel %vm85_vm2, %v65_v14, 0.0 }
  0x15   :  { %v89_v29 = vsel %vm56_vm0, %v88_v27, 0.0 }
  0x16   :  { %169 = vpow2.f32 %v69_v15  ;;  %v90_v32 = vadd.f32 %v89_v29, %v87_v30 }
  0x17   :  { %171 = vpow2.f32 %v67_v16 }
  0x18   :  { %v91_v34 = vrot.slane %v90_v32, 4 }
  0x1a   :  { %v92_v37 = vadd.f32 %v91_v34, %v90_v32 }
  0x1c   :  { %v170_v17 = vpop.eup %169  ;;  %v93_v39 = vrot.slane %v92_v37, 2 }
  0x1d   :  { %v172_v19 = vpop.eup %171  ;;  %v71_v20 = vsel %vm56_vm0, %v170_v17, 0.0 }
  0x1e   :  { %v72_v23 = vadd.f32 %v172_v19, %v71_v20  ;;  %v94_v42 = vadd.f32 %v93_v39, %v92_v37 }
  0x20   :  { %v73_v26 = vrot.slane %v72_v23, 4  ;;  %v95_v46 = vrot.slane %v94_v42, 1 }
  0x22   :  { %v74_v28 = vadd.f32 %v73_v26, %v72_v23  ;;  %v96_v51 = vadd.f32 %v95_v46, %v94_v42 }
  0x24   :  { %v75_v31 = vrot.slane %v74_v28, 2 }
  0x26   :  { %v76_v33 = vadd.f32 %v75_v31, %v74_v28 }
  0x28   :  { %v77_v35 = vrot.slane %v76_v33, 1 }
  0x2a   :  { %v78_v38 = vadd.f32 %v77_v35, %v76_v33 }
  0x2c   :  { %173 = vlog2.f32 %v78_v38 }
  0x32   :  { %v174_v48 = vpop.eup %173 }
  0x33   :  { %v80_v50 = vmul.f32 0.6931472, %v174_v48 }
  0x35   :  { %v118_v56 = vsub.f32 %v80_v50, %v96_v51 }
  0x74   :  { %v105_v36 = vpop.permute.xlu0 %104 }
  0x75   :  { %v108_v40 = vsel %vm86_vm1, %v105_v36, 0.0 }
  0x76   :  { %v109_v43 = vsel %vm56_vm0, %v108_v40, 0.0 }
  0x7c   :  { %v100_v41 = vpop.permute.xlu0 %99 }
  0x7d   :  { %v107_v44 = vsel %vm85_vm2, %v100_v41, 0.0 }
  0x7e   :  { %v110_v45 = vadd.f32 %v109_v43, %v107_v44 }
  0x80   :  { %v111_v47 = vrot.slane %v110_v45, 4 }
  0x82   :  { %v112_v49 = vadd.f32 %v111_v47, %v110_v45 }
  0x84   :  { %v113_v52 = vrot.slane %v112_v49, 2 }
  0x86   :  { %v114_v53 = vadd.f32 %v113_v52, %v112_v49 }
  0x88   :  { %v115_v55 = vrot.slane %v114_v53, 1 }
  0x8a   :  { %v116_v57 = vadd.f32 %v115_v55, %v114_v53 }
  0x8c   :  { %v119_v58 = vmul.f32 %v118_v56, %v116_v57 }
  0x8e   :  { %v120_v59 = vsel %vm117_vm3, %v119_v58, 0.0 }
  0x8f   :  { %v122_v60 = vsub.f32 0.0, %v120_v59 }
  0x91   :  { %v123_v61 = vmul.f32 1.442695, %v122_v60 }
  0x93   :  { %175 = vpow2.f32 %v123_v61 }
  0x99   :  { %v176_v62 = vpop.eup %175 }
  0x9a   :  { %v125_v63 = vsub.f32 1.0, %v176_v62 }
  0x9c   :  { %v126_v0 = vmul.f32 %v125_v63, %v125_v63 }
  0x9e   :  { %v127_v2 = vmul.f32 %v126_v0, %v120_v59 }
  0xa0   :  { %v128_v3 = vadd.f32 %v127_v2, %v121_v1 }
  0xa2   :  { %129 = vst [vmem:[#allocation2] sm:$0x1] %v128_v3 }
  0xa9   :  { %v133_v4 = vld [vmem:[#allocation2] sm:$0x1] }
  0xaa   :  { %v134_v5 = vsel %vm56_vm0, %v133_v4, 0.0 }
  0xab   :  { %135 = vadd.xlane.f32.xlu1 %v134_v5 }
 0x11e   :  { %v136_v6 = vpop.xlane.xlu1 %135 }
 0x11f   :  { %138 = vst.msk [vmem:[#allocation3] sm:$0x1] %vm137_vm4, %v136_v6 }
 0x120   :  { %149 = dma.vmem_to_hbm [thread:$0]  %s145_s22, 16, %s147_s25, [#allocation4]  }
 0x121   :  { %201 = dma.done.wait [#allocation4], 16  }
 0x122   :  { %202 = vsyncadd [#allocation4], 4294967280 }
 0x123   :  { %154 = vsyncpa [#allocation4], 1 }

</bundles_post_ra>
